<compile_context>
chip_gen: v6e
topology: v6e:2x2x1
jax: 0.10.0
libtpu: 0.0.40
codegen_flags: <defaults>
</compile_context>

<pallas_src>
import functools

import jax
import jax.numpy as jnp
from jax.experimental import pallas as pl
from jax.experimental.pallas import tpu as pltpu


# ----------------------------------------------------------------------------
# LayerNorm (manual, torch.std-style UNBIASED std, eps added to std)
# ----------------------------------------------------------------------------
def _layernorm_kernel(x_ref, a_ref, b_ref, g_ref, gt_ref, o_ref, *, eps, d):
    # x_ref: (tm, W) rows, each row holds g = W // d independent feature groups
    # a_ref/b_ref: (1, W) scale/shift (tiled per group)
    # g_ref: (W, g) 0/1 group indicator; gt_ref: (g, W) its transpose.
    x = x_ref[...].astype(jnp.float32)
    gmat = g_ref[...]
    gmat_t = gt_ref[...]

    n = jnp.float32(d)
    denom = jnp.float32(max(d - 1, 1))  # torch.std default: unbiased (N-1); guard d==1

    # Single-pass stats; segmented lane reduction done on the (otherwise idle) MXU.
    s1 = jnp.dot(x, gmat, preferred_element_type=jnp.float32)       # (tm, g) sum
    s2 = jnp.dot(x * x, gmat, preferred_element_type=jnp.float32)   # (tm, g) sum of squares
    mean = s1 / n
    var = jnp.maximum((s2 - n * mean * mean) / denom, 0.0)
    inv = pl.reciprocal(jnp.sqrt(var) + jnp.float32(eps), approx=True)  # EUP slot

    # Broadcast per-group stats back across lanes via the indicator transpose.
    mean_b = jnp.dot(mean, gmat_t, preferred_element_type=jnp.float32)  # (tm, W)
    inv_b = jnp.dot(inv, gmat_t, preferred_element_type=jnp.float32)    # (tm, W)

    y = (x - mean_b) * inv_b * a_ref[...] + b_ref[...]
    o_ref[...] = y.astype(o_ref.dtype)


def layernorm_pallas(x, a_2, b_2, eps=1e-6, max_block_rows=1024):
    """x: (..., D); a_2, b_2: (D,). Normalizes over the last axis (unbiased std)."""
    orig_shape = x.shape
    D = orig_shape[-1]
    rows = 1
    for s in orig_shape[:-1]:
        rows *= s

    # Lane-dense packing: fold g rows into the 128-lane axis when D < 128 so
    # every vld/vst uses all lanes and output stores are unmasked.
    g = 128 // D if (D < 128 and 128 % D == 0) else 1
    W = g * D

    rows_f = pl.cdiv(rows, g)  # folded row count
    # Row tile: as large as fits a conservative VMEM budget
    # (input + output, double-buffered), capped by max_block_rows.
    budget = 32 * 1024 * 1024
    tm_cap = max(8, (budget // (16 * W)) // 8 * 8)
    tm = min(max_block_rows, tm_cap, rows_f)
    grid_m = pl.cdiv(rows_f, tm)
    rows_f_pad = grid_m * tm
    rows_pad = rows_f_pad * g

    x2d = x.reshape(rows, D)
    if rows_pad != rows:
        x2d = jnp.pad(x2d, ((0, rows_pad - rows), (0, 0)))
    xp = x2d.reshape(rows_f_pad, W)

    a_p = jnp.tile(a_2.reshape(1, D).astype(jnp.float32), (1, g))
    b_p = jnp.tile(b_2.reshape(1, D).astype(jnp.float32), (1, g))
    grp = jnp.arange(W, dtype=jnp.int32) // D
    gmat = (grp[:, None] == jnp.arange(g, dtype=jnp.int32)[None, :]).astype(jnp.float32)
    gmat_t = gmat.T

    out = pl.pallas_call(
        functools.partial(_layernorm_kernel, eps=eps, d=D),
        out_shape=jax.ShapeDtypeStruct((rows_f_pad, W), x.dtype),
        grid_spec=pltpu.PrefetchScalarGridSpec(
            num_scalar_prefetch=0,
            grid=(grid_m,),
            in_specs=[
                pl.BlockSpec((tm, W), lambda i: (i, 0)),
                pl.BlockSpec((1, W), lambda i: (0, 0)),
                pl.BlockSpec((1, W), lambda i: (0, 0)),
                pl.BlockSpec((W, g), lambda i: (0, 0)),
                pl.BlockSpec((g, W), lambda i: (0, 0)),
            ],
            out_specs=pl.BlockSpec((tm, W), lambda i: (i, 0)),
        ),
        compiler_params=pltpu.CompilerParams(
            dimension_semantics=("parallel",),
            vmem_limit_bytes=48 * 1024 * 1024,
        ),
    )(xp, a_p, b_p, gmat, gmat_t)
    out = out.reshape(rows_pad, D)[:rows]
    return out.reshape(orig_shape)


# ----------------------------------------------------------------------------
# Fused Linear (+ optional ReLU): y = x @ w_t + b
# ----------------------------------------------------------------------------
def _linear_kernel(x_ref, w_ref, b_ref, o_ref, *, relu):
    x = x_ref[...].astype(jnp.float32)
    w = w_ref[...].astype(jnp.float32)
    y = jnp.dot(x, w, preferred_element_type=jnp.float32) + b_ref[...].astype(jnp.float32)
    if relu:
        y = jnp.maximum(y, 0.0)
    o_ref[...] = y.astype(o_ref.dtype)


def linear_pallas(x2d, w_t, b, *, relu=False, block_rows=512):
    """x2d: (rows, in); w_t: (in, out) (already transposed); b: (out,)."""
    rows, in_dim = x2d.shape
    out_dim = w_t.shape[1]
    tm = min(block_rows, rows)
    grid_m = pl.cdiv(rows, tm)
    rows_pad = grid_m * tm
    if rows_pad != rows:
        x2d = jnp.pad(x2d, ((0, rows_pad - rows), (0, 0)))

    out = pl.pallas_call(
        functools.partial(_linear_kernel, relu=relu),
        out_shape=jax.ShapeDtypeStruct((rows_pad, out_dim), x2d.dtype),
        grid_spec=pltpu.PrefetchScalarGridSpec(
            num_scalar_prefetch=0,
            grid=(grid_m,),
            in_specs=[
                pl.BlockSpec((tm, in_dim), lambda i: (i, 0)),
                pl.BlockSpec((in_dim, out_dim), lambda i: (0, 0)),
                pl.BlockSpec((1, out_dim), lambda i: (0, 0)),
            ],
            out_specs=pl.BlockSpec((tm, out_dim), lambda i: (i, 0)),
        ),
        compiler_params=pltpu.CompilerParams(dimension_semantics=("parallel",)),
    )(x2d, w_t, b.reshape(1, out_dim))
    return out[:rows]


# ----------------------------------------------------------------------------
# GRU layer: grid over time, hidden state carried in VMEM scratch.
# Input projections (x_t @ W_i*^T + biases) are hoisted out of the recurrence.
# Gate order matches torch.nn.GRU: r, z, n.
# ----------------------------------------------------------------------------
def _gru_step_kernel(pre_r_ref, pre_z_ref, pre_n_ref,
                     whr_ref, whz_ref, whn_ref, bhn_ref, h0_ref,
                     y_ref, h_scr):
    t = pl.program_id(0)

    @pl.when(t == 0)
    def _():
        h_scr[...] = h0_ref[...].astype(jnp.float32)

    h = h_scr[...]  # (batch, size) f32
    hr = jnp.dot(h, whr_ref[...].astype(jnp.float32), preferred_element_type=jnp.float32)
    hz = jnp.dot(h, whz_ref[...].astype(jnp.float32), preferred_element_type=jnp.float32)
    hn = (jnp.dot(h, whn_ref[...].astype(jnp.float32), preferred_element_type=jnp.float32)
          + bhn_ref[...].astype(jnp.float32))

    def _sigmoid(v):
        return 1.0 / (1.0 + jnp.exp(-v))

    r = _sigmoid(pre_r_ref[0].astype(jnp.float32) + hr)
    z = _sigmoid(pre_z_ref[0].astype(jnp.float32) + hz)
    n = jnp.tanh(pre_n_ref[0].astype(jnp.float32) + r * hn)
    h_new = (1.0 - z) * n + z * h

    h_scr[...] = h_new
    y_ref[0] = h_new.astype(y_ref.dtype)


def gru_layer_pallas(x_seq, w_ih, w_hh, b_ih, b_hh, h0):
    """x_seq: (seq, batch, in); weights in PyTorch layout:
    w_ih (3*size, in), w_hh (3*size, size), b_ih/b_hh (3*size,). Returns (seq, batch, size)."""
    seq, batch, in_size = x_seq.shape
    size = w_hh.shape[1]

    # Per-gate splits done once on the host (avoids in-kernel lane slicing).
    w_ir, w_iz, w_in = w_ih[:size], w_ih[size:2 * size], w_ih[2 * size:]
    w_hr, w_hz, w_hn = w_hh[:size], w_hh[size:2 * size], w_hh[2 * size:]
    b_ir, b_iz, b_in = b_ih[:size], b_ih[size:2 * size], b_ih[2 * size:]
    b_hr, b_hz, b_hn = b_hh[:size], b_hh[size:2 * size], b_hh[2 * size:]

    # Hoist the input-to-hidden matmuls out of the sequential recurrence.
    # (b_hr / b_hz can be folded here; b_hn must stay inside r * (...).)
    x2d = x_seq.reshape(seq * batch, in_size)
    pre_r = linear_pallas(x2d, w_ir.T, b_ir + b_hr).reshape(seq, batch, size)
    pre_z = linear_pallas(x2d, w_iz.T, b_iz + b_hz).reshape(seq, batch, size)
    pre_n = linear_pallas(x2d, w_in.T, b_in).reshape(seq, batch, size)

    step_map = lambda t: (t, 0, 0)
    const_map = lambda t: (0, 0)

    y = pl.pallas_call(
        _gru_step_kernel,
        out_shape=jax.ShapeDtypeStruct((seq, batch, size), x_seq.dtype),
        grid_spec=pltpu.PrefetchScalarGridSpec(
            num_scalar_prefetch=0,
            grid=(seq,),
            in_specs=[
                pl.BlockSpec((1, batch, size), step_map),
                pl.BlockSpec((1, batch, size), step_map),
                pl.BlockSpec((1, batch, size), step_map),
                pl.BlockSpec((size, size), const_map),
                pl.BlockSpec((size, size), const_map),
                pl.BlockSpec((size, size), const_map),
                pl.BlockSpec((1, size), const_map),
                pl.BlockSpec((batch, size), const_map),
            ],
            out_specs=pl.BlockSpec((1, batch, size), step_map),
            scratch_shapes=[pltpu.VMEM((batch, size), jnp.float32)],
        ),
        compiler_params=pltpu.CompilerParams(dimension_semantics=("arbitrary",)),
    )(pre_r, pre_z, pre_n, w_hr.T, w_hz.T, w_hn.T, b_hn.reshape(1, size), h0)
    return y


# ----------------------------------------------------------------------------
# Full RNNDecoder forward (eval-mode semantics: dropout = identity)
# ----------------------------------------------------------------------------
def rnn_decoder_forward(tgt, mem, params, *, max_length, teacher_force,
                        bypass_bottleneck, eps=1e-6):
    batch = mem.shape[0]
    a_2, b_2 = params["norm_a"], params["norm_b"]
    size = a_2.shape[0]

    # self.dropout(tgt): identity in eval/inference mode.
    # TODO(synk): train-mode dropout (input + GRU inter-layer) not implemented.
    embedded = tgt

    if not bypass_bottleneck:
        m = linear_pallas(mem, params["unb_w"].T, params["unb_b"], relu=True)   # (batch, size)
        m = jnp.broadcast_to(m[:, None, :], (batch, max_length, size))          # repeat over seq
        m = layernorm_pallas(m, a_2, b_2, eps=eps)
    else:
        m = mem

    if teacher_force:
        m = jnp.concatenate([embedded, m], axis=2)

    x = jnp.transpose(m, (1, 0, 2))  # (seq, batch, features) — torch permute(1, 0, 2)
    h_layers = []
    for lyr in params["gru"]:
        h0 = jnp.zeros((batch, size), dtype=x.dtype)  # initH -> zeros
        x = gru_layer_pallas(x, lyr["w_ih"], lyr["w_hh"], lyr["b_ih"], lyr["b_hh"], h0)
        h_layers.append(x[-1])  # last timestep == final hidden state of this layer
    h = jnp.stack(h_layers, axis=0)                  # (N, batch, size)

    y = jnp.transpose(x, (1, 0, 2))                  # (batch, seq, size)
    y = layernorm_pallas(y, a_2, b_2, eps=eps)
    return y, h


# ----------------------------------------------------------------------------
# Pure-JAX reference (torch semantics) for the sanity check
# ----------------------------------------------------------------------------
def _layernorm_ref(x, a, b, eps):
    d = x.shape[-1]
    mean = jnp.mean(x, axis=-1, keepdims=True)
    var = jnp.sum((x - mean) ** 2, axis=-1, keepdims=True) / max(d - 1, 1)
    return a * (x - mean) / (jnp.sqrt(var) + eps) + b


def _rnn_decoder_ref(tgt, mem, params, *, max_length, teacher_force,
                     bypass_bottleneck, eps=1e-6):
    batch = mem.shape[0]
    a_2, b_2 = params["norm_a"], params["norm_b"]
    size = a_2.shape[0]
    embedded = tgt
    if not bypass_bottleneck:
        m = jax.nn.relu(mem @ params["unb_w"].T + params["unb_b"])
        m = jnp.broadcast_to(m[:, None, :], (batch, max_length, size))
        m = _layernorm_ref(m, a_2, b_2, eps)
    else:
        m = mem
    if teacher_force:
        m = jnp.concatenate([embedded, m], axis=2)
    x = jnp.transpose(m, (1, 0, 2))
    hs = []
    for lyr in params["gru"]:
        w_ih, w_hh, b_ih, b_hh = lyr["w_ih"], lyr["w_hh"], lyr["b_ih"], lyr["b_hh"]
        h = jnp.zeros((batch, size), dtype=x.dtype)
        outs = []
        for t in range(x.shape[0]):
            gi = x[t] @ w_ih.T + b_ih
            gh = h @ w_hh.T + b_hh
            i_r, i_z, i_n = jnp.split(gi, 3, axis=-1)
            h_r, h_z, h_n = jnp.split(gh, 3, axis=-1)
            r = jax.nn.sigmoid(i_r + h_r)
            z = jax.nn.sigmoid(i_z + h_z)
            n = jnp.tanh(i_n + r * h_n)
            h = (1.0 - z) * n + z * h
            outs.append(h)
        x = jnp.stack(outs, axis=0)
        hs.append(h)
    hn = jnp.stack(hs, axis=0)
    y = jnp.transpose(x, (1, 0, 2))
    return _layernorm_ref(y, a_2, b_2, eps), hn


if __name__ == "__main__":
    # Small shapes consistent with RNNDecoder(size, d_latent, N, dropout, tgt_length, tf, ...)
    batch = 2
    size = 32
    d_latent = 16
    n_layers = 2
    tgt_length = 7
    max_length = tgt_length + 1          # 8
    teacher_force = True                 # gru input size = 2 * size
    bypass_bottleneck = False
    eps = 1e-6
    gru_in0 = 2 * size if teacher_force else size

    key = jax.random.PRNGKey(0)
    keys = jax.random.split(key, 3 + 4 * n_layers)
    tgt = jax.random.normal(keys[0], (batch, max_length, size), dtype=jnp.float32)
    mem = jax.random.normal(keys[1], (batch, d_latent), dtype=jnp.float32)

    scale = 0.2
    params = {
        "norm_a": jnp.ones((size,), jnp.float32),    # LayerNorm a_2
        "norm_b": jnp.zeros((size,), jnp.float32),   # LayerNorm b_2
        "unb_w": scale * jax.random.normal(keys[2], (size, d_latent), dtype=jnp.float32),
        "unb_b": jnp.zeros((size,), jnp.float32),
        "gru": [],
    }
    kidx = 3
    for l in range(n_layers):
        in_size = gru_in0 if l == 0 else size
        params["gru"].append({
            "w_ih": scale * jax.random.normal(keys[kidx + 0], (3 * size, in_size), dtype=jnp.float32),
            "w_hh": scale * jax.random.normal(keys[kidx + 1], (3 * size, size), dtype=jnp.float32),
            "b_ih": scale * jax.random.normal(keys[kidx + 2], (3 * size,), dtype=jnp.float32),
            "b_hh": scale * jax.random.normal(keys[kidx + 3], (3 * size,), dtype=jnp.float32),
        })
        kidx += 4

    y, h = rnn_decoder_forward(
        tgt, mem, params, max_length=max_length,
        teacher_force=teacher_force, bypass_bottleneck=bypass_bottleneck, eps=eps)
    y = jax.block_until_ready(y)
    h = jax.block_until_ready(h)

    y_ref, h_ref = _rnn_decoder_ref(
        tgt, mem, params, max_length=max_length,
        teacher_force=teacher_force, bypass_bottleneck=bypass_bottleneck, eps=eps)

    assert y.shape == (batch, max_length, size)
    assert h.shape == (n_layers, batch, size)
    # Tolerance covers the approximate EUP reciprocal + single-pass variance
    # used in the Pallas LayerNorm (vs. exact two-pass reference).
    assert jnp.allclose(y, y_ref, atol=2e-2, rtol=2e-2), "output mismatch vs reference"
    assert jnp.allclose(h, h_ref, atol=2e-2, rtol=2e-2), "hidden mismatch vs reference"

    print("KERNEL_OK")
</pallas_src>

<mosaic_0001>
module attributes {stable_mosaic.version = 11 : i64} {
  func.func @_linear_kernel(%arg0: i32, %arg1: memref<2x16xf32, #tpu.memory_space<vmem>>, %arg2: memref<16x32xf32, #tpu.memory_space<vmem>>, %arg3: memref<1x32xf32, #tpu.memory_space<vmem>>, %arg4: memref<2x32xf32, #tpu.memory_space<vmem>>) attributes {dimension_semantics = [#tpu.dimension_semantics<parallel>], iteration_bounds = array<i64: 1>, scalar_prefetch = 0 : i64, scratch_operands = 0 : i64, tpu.core_type = #tpu.core_type<tc>, window_params = [{transform_indices = @transform_0, window_bounds = array<i64: 2, 16>}, {pipeline_mode = #tpu.pipeline_mode<synchronous>, transform_indices = @transform_1, window_bounds = array<i64: 16, 32>}, {pipeline_mode = #tpu.pipeline_mode<synchronous>, transform_indices = @transform_2, window_bounds = array<i64: 1, 32>}, {transform_indices = @transform_3, window_bounds = array<i64: 2, 32>}]} {
    %c0 = arith.constant 0 : index
    %c0_0 = arith.constant 0 : index
    %0 = vector.load %arg1[%c0, %c0_0] : memref<2x16xf32, #tpu.memory_space<vmem>>, vector<2x16xf32>
    %c0_1 = arith.constant 0 : index
    %c0_2 = arith.constant 0 : index
    %1 = vector.load %arg2[%c0_1, %c0_2] : memref<16x32xf32, #tpu.memory_space<vmem>>, vector<16x32xf32>
    %cst = arith.constant dense<0.000000e+00> : vector<2x32xf32>
    %2 = tpu.matmul %0, %1, %cst {dimension_numbers = #tpu.dot_dimension_numbers<[1], [0], [0], [1], [0, 0, 1, 1], [], []>} : vector<2x16xf32>, vector<16x32xf32>, vector<2x32xf32> -> vector<2x32xf32>
    %c0_3 = arith.constant 0 : index
    %c0_4 = arith.constant 0 : index
    %3 = vector.load %arg3[%c0_3, %c0_4] : memref<1x32xf32, #tpu.memory_space<vmem>>, vector<1x32xf32>
    %4 = vector.broadcast %3 : vector<1x32xf32> to vector<2x32xf32>
    %5 = arith.addf %2, %4 : vector<2x32xf32>
    %cst_5 = arith.constant 0.000000e+00 : f32
    %6 = vector.broadcast %cst_5 : f32 to vector<2x32xf32>
    %7 = arith.maximumf %5, %6 : vector<2x32xf32>
    %c0_6 = arith.constant 0 : index
    %c0_7 = arith.constant 0 : index
    %8 = vector.load %arg4[%c0_6, %c0_7] : memref<2x32xf32, #tpu.memory_space<vmem>>, vector<2x32xf32>
    tpu.vector_store %arg4[%c0_6, %c0_7], %7 {strides = array<i32>} : memref<2x32xf32, #tpu.memory_space<vmem>>, vector<2x32xf32>,
    return
  }
  func.func @transform_0(%arg0: i32) -> (i32, i32) {
    %c0_i32 = arith.constant 0 : i32
    %c0_i32_0 = arith.constant 0 : i32
    return %arg0, %c0_i32 : i32, i32
  }
  func.func @transform_1(%arg0: i32) -> (i32, i32) {
    %c0_i32 = arith.constant 0 : i32
    %c0_i32_0 = arith.constant 0 : i32
    %c0_i32_1 = arith.constant 0 : i32
    return %c0_i32, %c0_i32_0 : i32, i32
  }
  func.func @transform_2(%arg0: i32) -> (i32, i32) {
    %c0_i32 = arith.constant 0 : i32
    %c0_i32_0 = arith.constant 0 : i32
    %c0_i32_1 = arith.constant 0 : i32
    return %c0_i32, %c0_i32_0 : i32, i32
  }
  func.func @transform_3(%arg0: i32) -> (i32, i32) {
    %c0_i32 = arith.constant 0 : i32
    %c0_i32_0 = arith.constant 0 : i32
    return %arg0, %c0_i32 : i32, i32
  }
}

</mosaic_0001>

<bundles_post_ra>
// kernel: tpu_custom_call.1
= control target key start
LH: loop header
LB: loop body
LE: loop exit
PB: predicated region body
PF: predicated region fallthrough
CT: control target
= control target key end

     0   :  { %8 = vsyncpa [#allocation3], 0  ;;  %s268_s0 = inlined_call_operand.hbm [shape: f32[2,16], index: 0, kind: input, shape index: {}]   ;;  %s269_s1 = inlined_call_operand.hbm [shape: f32[16,32], index: 1, kind: input, shape index: {}]   ;;  %s270_s2 = inlined_call_operand.vmem [shape: f32[1,32], index: 2, kind: input, shape index: {}]   ;;  %s271_s3 = inlined_call_operand.hbm [shape: f32[2,32], index: 3, kind: output, shape index: {}]  }
   0x1   :  { %9 = vsyncpa [#allocation6], 0 }
   0x2   :  { %10 = vsyncpa [#allocation4], 0  ;;  %s229_s12 = smov [#allocation2]   ;;  %s230_s14 = smov [#allocation5]  }
   0x3   :  { %s17_s13 = sshll.u32 %s229_s12, 4  ;;  %s26_s15 = sshll.u32 %s230_s14, 4  ;;  %s18_s13 = int_to_ptr.vmem [resolvable:$true] %s17_s13  ;;  %s27_s15 = int_to_ptr.vmem [resolvable:$true] %s26_s15 }
   0x4   :  { %s171_s16 = scalar_lea.vmem %s18_s13, 32  ;;  %p176_p1 = scmp.lt.s32.totalorder %s18_s13, %s18_s13 }
   0x5   :  { %p172_p0 = scmp.ne.s32.totalorder %s18_s13, %s171_s16  ;;  %p177_p2 = scmp.lt.s32.totalorder %s171_s16, %s171_s16 }
   0x7   :  { %p178_p3 = por %p177_p2, %p176_p1 }
   0x9   :  { %p179_p4 = pnand %p178_p3, %p172_p0 }
   0xb   :  { %182 = shalt.err (!%p179_p4)
}
   0xc   :  { %20 = dma.hbm_to_vmem [thread:$0]  %s268_s0, 32, %s18_s13, [#allocation3]  }
   0xd   :  { %s191_s19 = scalar_lea.vmem %s27_s15, 256  ;;  %p196_p6 = scmp.lt.s32.totalorder %s27_s15, %s27_s15 }
   0xe   :  { %p192_p5 = scmp.ne.s32.totalorder %s27_s15, %s191_s19  ;;  %p197_p7 = scmp.lt.s32.totalorder %s191_s19, %s191_s19 }
  0x10   :  { %p198_p8 = por %p197_p7, %p196_p6 }
  0x12   :  { %p199_p9 = pnand %p198_p8, %p192_p5 }
  0x14   :  { %202 = shalt.err (!%p199_p9)
}
  0x15   :  { %s231_s20 = smov 128   ;;  %s232_s21 = smov 8  }
  0x16   :  { %32 = dma.hbm_to_vmem [thread:$0]  %s269_s1, 256, %s27_s15, [#allocation6], %s231_s20, %s231_s20, %s232_s21  }
  0x17   :  { %223 = dma.done.wait [#allocation3], 32  }
  0x18   :  { %224 = vsyncadd [#allocation3], 4294967264 }
  0x19   :  { %225 = dma.done.wait [#allocation6], 256  }
  0x1a   :  { %226 = vsyncadd [#allocation6], 4294967040  ;;  %v233_v0 = vmov 0.0   ;;  %vm234_vm0 = vmmov 0   ;;  %v43_v1 = vld [vmem:[#allocation5 + $0x8] sm:$0xff]  ;;  %v42_v2 = vld [vmem:[#allocation5] sm:$0xff] }
  0x1b   :  { %149 = vmatprep.subr.mxu0 %v233_v0  ;;  %153 = vmatprep.mubr.msk.f32.mxu0 %vm234_vm0, %v233_v0  ;;  %v41_v3 = vld [vmem:[#allocation2] sm:$0x3]  ;;  %vm51_vm1 = vcmask 130048   ;;  %s235_s1 = smov [#allocation7]   ;;  %vm126_vm2 = vcmask 254976  }
  0x1c   :  { %150 = vmatpush3.msra.mxu0 %v43_v1  ;;  %v144_v4 = vld [vmem:[%s270_s2] ss:$0 sm:$0xff]  ;;  %s134_s25 = sshll.u32 %s235_s1, 4  ;;  %s135_s25 = int_to_ptr.vmem [resolvable:$true] %s134_s25 }
  0x1d   :  { %151 = vmatprep.subr.mxu0 %v233_v0  ;;  %s203_s26 = scalar_lea.vmem %s135_s25, 32  ;;  %p208_p11 = scmp.lt.s32.totalorder %s135_s25, %s135_s25 }
  0x1e   :  { %152 = vmatpush3.msra.mxu0 %v42_v2  ;;  %p204_p10 = scmp.ne.s32.totalorder %s135_s25, %s203_s26  ;;  %p209_p12 = scmp.lt.s32.totalorder %s203_s26, %s203_s26 }
  0x1f   :  { %154 = vmatmul.mubr.msk.f32.vlgmr.msra.gmra.mxu0 %vm51_vm1, %v41_v3 }
  0x20   :  { %p210_p13 = por %p209_p12, %p208_p11 }
  0x22   :  { %p211_p0 = pnand %p210_p13, %p204_p10 }
  0xdf   :  { %v121_v5 = vpop.f32.mrf.mxu0 }
  0xe0   :  { %v122_v6 = vadd.f32 %v144_v4, %v121_v5 }
  0xe1   :  { %v155_v7 = vpop.f32.mrf.mxu0 }
  0xe2   :  { %v125_v8 = vmax.f32 %v122_v6, 0.0 }
  0xe4   :  { %127 = vst.msk [vmem:[#allocation7] sm:$0x3] %vm126_vm2, %v125_v8 }
  0xe5   :  { %214 = shalt.err (!%p211_p0)
}
  0xe6   :  { %137 = dma.vmem_to_hbm [thread:$0]  %s135_s25, 32, %s271_s3, [#allocation4]  }
  0xe7   :  { %227 = dma.done.wait [#allocation4], 32  }
  0xe8   :  { %228 = vsyncadd [#allocation4], 4294967264 }
  0xe9   :  { %141 = vsyncpa [#allocation3], 1 }
  0xea   :  { %142 = vsyncpa [#allocation6], 1 }
  0xeb   :  { %143 = vsyncpa [#allocation4], 1 }

</bundles_post_ra>
